<compile_context>
chip_gen: v5e
topology: v5e:2x2
jax: 0.10.0
libtpu: 0.0.40
codegen_flags: <defaults>
</compile_context>

<pallas_src>
import functools

import jax
import jax.numpy as jnp
from jax import lax
from jax.experimental import pallas as pl
from jax.experimental.pallas import tpu as pltpu

F_PAD = 128  # lane-dense feature width (activations / weight output dim)


# ----------------------------- Pallas kernel --------------------------------
def gat_stack_kernel(x_ref, adj_ref, w_ref, p_ref, o_ref, *, out_dims, k_pad):
    """Fused forward pass of the whole GATConv stack.

    x_ref:   (N, F_PAD)          node features, zero-padded (f32)
    adj_ref: (N, N)              0/1 adjacency, adj[i, j] = edge j -> i (f32)
    w_ref:   (L, K_PAD, F_PAD)   per-layer weights (bf16); column F_PAD-1 of
                                 each layer holds W @ a_dst^T (a_dst folded in)
    p_ref:   (L, 8, F_PAD)       per-layer params (f32): row 0 = a_src, 1 = bias
    o_ref:   (N, F_PAD)          final output (valid lanes: out_dims[-1])
    """
    x = x_ref[...]                     # activations stay resident across layers
    adj = adj_ref[...]
    num_layers = len(out_dims)
    neg_big = jnp.float32(-1e30)

    for li in range(num_layers):       # static unroll: per-layer masks differ
        w = w_ref[li]                  # (K_PAD, F_PAD) bf16
        par = p_ref[li]                # (8, F_PAD) f32
        a_src = par[0:1, :]
        bias = par[1:2, :]

        # linear transform (MXU, bf16 operands, f32 accumulate)
        xk = x[:, :k_pad].astype(jnp.bfloat16)                       # (N, K_PAD)
        h = jnp.dot(xk, w, preferred_element_type=jnp.float32)       # (N, F_PAD)
        h_bf = h.astype(jnp.bfloat16)

        # attention logits:  e[i, j] = h_i . a_dst + h_j . a_src
        # a_dst is folded into output column F_PAD-1 of W, so h[:, -1] already
        # holds h_i . a_dst (padded rows of W are exactly zero).
        e_dst = h[:, F_PAD - 1:F_PAD]                                 # (N, 1)
        e_src = lax.dot_general(a_src.astype(jnp.bfloat16), h_bf,
                                (((1,), (1,)), ((), ())),
                                preferred_element_type=jnp.float32)   # (1, N)
        logits = e_dst + e_src                                        # (N, N)

        # LeakyReLU(negative_slope=0.2): single VALU max
        logits = jnp.maximum(logits, 0.2 * logits)

        # edge-masked softmax over sources j (masked max => exp args <= 0;
        # self-loops guarantee every row has at least one edge, denom >= 1)
        lm = jnp.where(adj > 0.0, logits, neg_big)
        m = jnp.max(lm, axis=-1, keepdims=True)
        p = jnp.exp(lm - m)
        denom = jnp.sum(p, axis=-1, keepdims=True)
        alpha = p * pl.reciprocal(denom, approx=True)                 # (N, N)

        # aggregate messages (MXU) + bias
        out = jnp.dot(alpha.astype(jnp.bfloat16), h_bf,
                      preferred_element_type=jnp.float32) + bias      # (N, F_PAD)

        if li < num_layers - 1:
            # SiLU gate: x * sigmoid(x); reciprocal on the (idle) EUP slot
            out = out * pl.reciprocal(1.0 + jnp.exp(-out), approx=True)
        else:
            # exact log_softmax restricted to the real class lanes
            nc = out_dims[-1]
            col = lax.broadcasted_iota(jnp.int32, out.shape, 1)
            valid = col < nc
            mm = jnp.max(jnp.where(valid, out, neg_big), axis=-1, keepdims=True)
            z = out - mm
            sum_exp = jnp.sum(jnp.where(valid, jnp.exp(z), 0.0),
                              axis=-1, keepdims=True)
            out = z - jnp.log(sum_exp)

        x = out

    o_ref[...] = x


# ------------------------- parameter packing (once) --------------------------
def pack_gat_params(params):
    """Pads/stacks per-layer parameters once (hoisted out of the hot path)."""
    L = len(params)
    in_dims = tuple(int(p["w"].shape[0]) for p in params)
    out_dims = tuple(int(p["w"].shape[1]) for p in params)

    k_pad = max(16, -(-max(in_dims) // 16) * 16)   # round up to sublane multiple
    # Invariants required by the in-kernel shortcuts:
    #  * the a_dst fold column (F_PAD-1) lies outside every real output range
    #    and outside the K slice of the next layer,
    #  * all padded weight rows/lanes are exactly zero.
    assert k_pad < F_PAD and max(out_dims) < F_PAD - 1
    assert max(out_dims) <= k_pad and max(in_dims) <= k_pad

    w_stack = jnp.zeros((L, k_pad, F_PAD), jnp.float32)
    p_stack = jnp.zeros((L, 8, F_PAD), jnp.float32)
    for li, p in enumerate(params):
        fi, fo = p["w"].shape
        w_stack = w_stack.at[li, :fi, :fo].set(p["w"])
        # fold a_dst into the spare output column: h[:, -1] = x @ (W @ a_dst^T)
        w_stack = w_stack.at[li, :fi, F_PAD - 1].set(p["w"] @ p["a_dst"][0])
        p_stack = p_stack.at[li, 0, :fo].set(p["a_src"][0])
        p_stack = p_stack.at[li, 1, :fo].set(p["b"][0])

    return dict(w=w_stack.astype(jnp.bfloat16),   # bf16 MXU operand / half DMA
                p=p_stack,                         # tiny; kept f32 (exact bias)
                out_dims=out_dims, k_pad=k_pad)


# --------------------------------- wrapper -----------------------------------
def gat_forward(packed, x, adj):
    """Runs the fused GAT stack; returns (N, num_classes) log-probabilities."""
    N, f_in = x.shape
    out_dims = packed["out_dims"]
    k_pad = packed["k_pad"]
    L = packed["w"].shape[0]
    num_classes = out_dims[-1]

    # only the node features are padded per call
    x_pad = jnp.zeros((N, F_PAD), jnp.float32).at[:, :f_in].set(x)

    kernel = functools.partial(gat_stack_kernel, out_dims=out_dims, k_pad=k_pad)
    out_pad = pl.pallas_call(
        kernel,
        out_shape=jax.ShapeDtypeStruct((N, F_PAD), jnp.float32),
        grid=(1,),
        in_specs=[
            pl.BlockSpec((N, F_PAD), lambda i: (0, 0)),             # x (padded)
            pl.BlockSpec((N, N), lambda i: (0, 0)),                 # adjacency
            pl.BlockSpec((L, k_pad, F_PAD), lambda i: (0, 0, 0)),   # stacked W
            pl.BlockSpec((L, 8, F_PAD), lambda i: (0, 0, 0)),       # a_src/bias
        ],
        out_specs=pl.BlockSpec((N, F_PAD), lambda i: (0, 0)),
        compiler_params=pltpu.CompilerParams(
            dimension_semantics=("arbitrary",)),
    )(x_pad, adj, packed["w"], packed["p"])
    return out_pad[:, :num_classes]


# ------------------------------ pure-JAX reference ---------------------------
def gat_reference(params, x, adj):
    h = x
    L = len(params)
    for li, p in enumerate(params):
        hw = h @ p["w"]
        e = (hw @ p["a_dst"][0])[:, None] + (hw @ p["a_src"][0])[None, :]
        e = jnp.where(e >= 0.0, e, 0.2 * e)
        e = jnp.where(adj > 0.0, e, -jnp.inf)
        alpha = jax.nn.softmax(e, axis=-1)
        out = alpha @ hw + p["b"][0]
        if li < L - 1:
            out = out * jax.nn.sigmoid(out)
        else:
            out = jax.nn.log_softmax(out, axis=-1)
        h = out
    return h


# --------------------------- parameter construction --------------------------
def xavier_uniform(key, shape):
    fan_in, fan_out = shape[0], shape[1]
    limit = (6.0 / (fan_in + fan_out)) ** 0.5
    return jax.random.uniform(key, shape, jnp.float32, -limit, limit)


def init_gat_params(key, num_features, num_classes, width):
    dims = [num_features] + list(width) + [num_classes]
    params = []
    for li in range(len(dims) - 1):
        f_in, f_out = dims[li], dims[li + 1]
        key, kw, ks, kd = jax.random.split(key, 4)
        params.append(dict(
            w=xavier_uniform(kw, (f_in, f_out)),
            a_src=xavier_uniform(ks, (1, f_out)),
            a_dst=xavier_uniform(kd, (1, f_out)),
            b=jnp.zeros((1, f_out), jnp.float32),
        ))
    return params


# ----------------------------------- main ------------------------------------
if __name__ == "__main__":
    N = 32                 # nodes
    num_features = 16
    width = [32, 32]
    num_classes = 8
    E = 64                 # edges

    key = jax.random.PRNGKey(0)
    k_x, k_src, k_dst, k_par = jax.random.split(key, 4)

    # node features
    x = jax.random.normal(k_x, (N, num_features), jnp.float32)

    # random edge_index (2, E): row 0 = source j, row 1 = target i
    src = jax.random.randint(k_src, (E,), 0, N)
    dst = jax.random.randint(k_dst, (E,), 0, N)

    # dense adjacency adj[i, j] = 1 if edge j -> i, plus self-loops
    adj = jnp.zeros((N, N), jnp.float32).at[dst, src].set(1.0)
    adj = jnp.maximum(adj, jnp.eye(N, dtype=jnp.float32))

    params = init_gat_params(k_par, num_features, num_classes, width)
    packed = pack_gat_params(params)   # done once, outside the hot path

    out = gat_forward(packed, x, adj)
    out = jax.block_until_ready(out)

    assert out.shape == (N, num_classes)
    assert bool(jnp.all(jnp.isfinite(out)))
    # rows of log_softmax should exp-sum to 1
    assert bool(jnp.allclose(jnp.sum(jnp.exp(out), axis=1), 1.0, atol=1e-4))
    # match the exact f32 reference (bf16 matmuls + EUP approx reciprocal)
    ref = gat_reference(params, x, adj)
    assert bool(jnp.max(jnp.abs(out - ref)) < 0.1)

    print("KERNEL_OK")
</pallas_src>

<mosaic_0001>
module attributes {stable_mosaic.version = 11 : i64} {
  func.func @gat_stack_kernel(%arg0: i32, %arg1: memref<32x128xf32, #tpu.memory_space<vmem>>, %arg2: memref<32x32xf32, #tpu.memory_space<vmem>>, %arg3: memref<3x32x128xbf16, #tpu.memory_space<vmem>>, %arg4: memref<3x8x128xf32, #tpu.memory_space<vmem>>, %arg5: memref<32x128xf32, #tpu.memory_space<vmem>>) attributes {dimension_semantics = [#tpu.dimension_semantics<arbitrary>], iteration_bounds = array<i64: 1>, scalar_prefetch = 0 : i64, scratch_operands = 0 : i64, tpu.core_type = #tpu.core_type<tc>, window_params = [{pipeline_mode = #tpu.pipeline_mode<synchronous>, transform_indices = @transform_0, window_bounds = array<i64: 32, 128>}, {pipeline_mode = #tpu.pipeline_mode<synchronous>, transform_indices = @transform_1, window_bounds = array<i64: 32, 32>}, {pipeline_mode = #tpu.pipeline_mode<synchronous>, transform_indices = @transform_2, window_bounds = array<i64: 3, 32, 128>}, {pipeline_mode = #tpu.pipeline_mode<synchronous>, transform_indices = @transform_3, window_bounds = array<i64: 3, 8, 128>}, {pipeline_mode = #tpu.pipeline_mode<synchronous>, transform_indices = @transform_4, window_bounds = array<i64: 32, 128>}]} {
    %c0 = arith.constant 0 : index
    %c0_0 = arith.constant 0 : index
    %0 = vector.load %arg1[%c0, %c0_0] : memref<32x128xf32, #tpu.memory_space<vmem>>, vector<32x128xf32>
    %c0_1 = arith.constant 0 : index
    %c0_2 = arith.constant 0 : index
    %1 = vector.load %arg2[%c0_1, %c0_2] : memref<32x32xf32, #tpu.memory_space<vmem>>, vector<32x32xf32>
    %c0_3 = arith.constant 0 : index
    %c0_4 = arith.constant 0 : index
    %c0_5 = arith.constant 0 : index
    %2 = vector.load %arg3[%c0_3, %c0_4, %c0_5] : memref<3x32x128xbf16, #tpu.memory_space<vmem>>, vector<1x32x128xbf16>
    %3 = vector.shape_cast %2 : vector<1x32x128xbf16> to vector<32x128xbf16>
    %c0_6 = arith.constant 0 : index
    %c0_7 = arith.constant 0 : index
    %c0_8 = arith.constant 0 : index
    %4 = vector.load %arg4[%c0_6, %c0_7, %c0_8] : memref<3x8x128xf32, #tpu.memory_space<vmem>>, vector<1x8x128xf32>
    %5 = vector.shape_cast %4 : vector<1x8x128xf32> to vector<8x128xf32>
    %6 = vector.extract_strided_slice %5 {offsets = [0, 0], sizes = [1, 128], strides = [1, 1]} : vector<8x128xf32> to vector<1x128xf32>
    %7 = vector.extract_strided_slice %5 {offsets = [1, 0], sizes = [1, 128], strides = [1, 1]} : vector<8x128xf32> to vector<1x128xf32>
    %8 = vector.extract_strided_slice %0 {offsets = [0, 0], sizes = [32, 32], strides = [1, 1]} : vector<32x128xf32> to vector<32x32xf32>
    %9 = arith.truncf %8 : vector<32x32xf32> to vector<32x32xbf16>
    %cst = arith.constant dense<0.000000e+00> : vector<32x128xf32>
    %10 = tpu.matmul %9, %3, %cst {dimension_numbers = #tpu.dot_dimension_numbers<[1], [0], [0], [1], [0, 0, 1, 1], [], []>} : vector<32x32xbf16>, vector<32x128xbf16>, vector<32x128xf32> -> vector<32x128xf32>
    %11 = arith.truncf %10 : vector<32x128xf32> to vector<32x128xbf16>
    %12 = vector.extract_strided_slice %10 {offsets = [0, 127], sizes = [32, 1], strides = [1, 1]} : vector<32x128xf32> to vector<32x1xf32>
    %13 = arith.truncf %6 : vector<1x128xf32> to vector<1x128xbf16>
    %cst_9 = arith.constant dense<0.000000e+00> : vector<1x32xf32>
    %14 = tpu.matmul %13, %11, %cst_9 {dimension_numbers = #tpu.dot_dimension_numbers<[1], [1], [0], [0], [0, 0, 1, 0], [], []>} : vector<1x128xbf16>, vector<32x128xbf16>, vector<1x32xf32> -> vector<1x32xf32>
    %15 = vector.broadcast %12 : vector<32x1xf32> to vector<32x32xf32>
    %16 = vector.broadcast %14 : vector<1x32xf32> to vector<32x32xf32>
    %17 = arith.addf %15, %16 : vector<32x32xf32>
    %cst_10 = arith.constant 2.000000e-01 : f32
    %18 = vector.broadcast %cst_10 : f32 to vector<32x32xf32>
    %19 = arith.mulf %18, %17 : vector<32x32xf32>
    %20 = arith.maximumf %17, %19 : vector<32x32xf32>
    %cst_11 = arith.constant 0.000000e+00 : f32
    %21 = vector.broadcast %cst_11 : f32 to vector<32x32xf32>
    %22 = arith.cmpf ogt, %1, %21 : vector<32x32xf32>
    %cst_12 = arith.constant -1.000000e+30 : f32
    %23 = vector.broadcast %cst_12 : f32 to vector<32x32xf32>
    %24 = arith.select %22, %20, %23 : vector<32x32xi1>, vector<32x32xf32>
    %cst_13 = arith.constant dense<0xFF800000> : vector<32xf32>
    %25 = vector.multi_reduction <maximumf>, %24, %cst_13 [1] : vector<32x32xf32> to vector<32xf32>
    %26 = vector.shape_cast %25 : vector<32xf32> to vector<32x1xf32>
    %27 = vector.broadcast %26 : vector<32x1xf32> to vector<32x32xf32>
    %28 = arith.subf %24, %27 : vector<32x32xf32>
    %29 = math.exp %28 : vector<32x32xf32>
    %cst_14 = arith.constant dense<0.000000e+00> : vector<32xf32>
    %30 = vector.multi_reduction <add>, %29, %cst_14 [1] : vector<32x32xf32> to vector<32xf32>
    %31 = vector.shape_cast %30 : vector<32xf32> to vector<32x1xf32>
    %32 = tpu.reciprocal %31 {approx = true} : vector<32x1xf32> -> vector<32x1xf32>
    %33 = vector.broadcast %32 : vector<32x1xf32> to vector<32x32xf32>
    %34 = arith.mulf %29, %33 : vector<32x32xf32>
    %35 = arith.truncf %34 : vector<32x32xf32> to vector<32x32xbf16>
    %cst_15 = arith.constant dense<0.000000e+00> : vector<32x128xf32>
    %36 = tpu.matmul %35, %11, %cst_15 {dimension_numbers = #tpu.dot_dimension_numbers<[1], [0], [0], [1], [0, 0, 1, 1], [], []>} : vector<32x32xbf16>, vector<32x128xbf16>, vector<32x128xf32> -> vector<32x128xf32>
    %37 = vector.broadcast %7 : vector<1x128xf32> to vector<32x128xf32>
    %38 = arith.addf %36, %37 : vector<32x128xf32>
    %cst_16 = arith.constant 0.000000e+00 : f32
    %39 = vector.broadcast %cst_16 : f32 to vector<32x128xf32>
    %40 = arith.subf %39, %38 : vector<32x128xf32>
    %41 = math.exp %40 : vector<32x128xf32>
    %cst_17 = arith.constant 1.000000e+00 : f32
    %42 = vector.broadcast %cst_17 : f32 to vector<32x128xf32>
    %43 = arith.addf %42, %41 : vector<32x128xf32>
    %44 = tpu.reciprocal %43 {approx = true} : vector<32x128xf32> -> vector<32x128xf32>
    %45 = arith.mulf %38, %44 : vector<32x128xf32>
    %c1 = arith.constant 1 : index
    %c0_18 = arith.constant 0 : index
    %c0_19 = arith.constant 0 : index
    %46 = vector.load %arg3[%c1, %c0_18, %c0_19] : memref<3x32x128xbf16, #tpu.memory_space<vmem>>, vector<1x32x128xbf16>
    %47 = vector.shape_cast %46 : vector<1x32x128xbf16> to vector<32x128xbf16>
    %c1_20 = arith.constant 1 : index
    %c0_21 = arith.constant 0 : index
    %c0_22 = arith.constant 0 : index
    %48 = vector.load %arg4[%c1_20, %c0_21, %c0_22] : memref<3x8x128xf32, #tpu.memory_space<vmem>>, vector<1x8x128xf32>
    %49 = vector.shape_cast %48 : vector<1x8x128xf32> to vector<8x128xf32>
    %50 = vector.extract_strided_slice %49 {offsets = [0, 0], sizes = [1, 128], strides = [1, 1]} : vector<8x128xf32> to vector<1x128xf32>
    %51 = vector.extract_strided_slice %49 {offsets = [1, 0], sizes = [1, 128], strides = [1, 1]} : vector<8x128xf32> to vector<1x128xf32>
    %52 = vector.extract_strided_slice %45 {offsets = [0, 0], sizes = [32, 32], strides = [1, 1]} : vector<32x128xf32> to vector<32x32xf32>
    %53 = arith.truncf %52 : vector<32x32xf32> to vector<32x32xbf16>
    %cst_23 = arith.constant dense<0.000000e+00> : vector<32x128xf32>
    %54 = tpu.matmul %53, %47, %cst_23 {dimension_numbers = #tpu.dot_dimension_numbers<[1], [0], [0], [1], [0, 0, 1, 1], [], []>} : vector<32x32xbf16>, vector<32x128xbf16>, vector<32x128xf32> -> vector<32x128xf32>
    %55 = arith.truncf %54 : vector<32x128xf32> to vector<32x128xbf16>
    %56 = vector.extract_strided_slice %54 {offsets = [0, 127], sizes = [32, 1], strides = [1, 1]} : vector<32x128xf32> to vector<32x1xf32>
    %57 = arith.truncf %50 : vector<1x128xf32> to vector<1x128xbf16>
    %cst_24 = arith.constant dense<0.000000e+00> : vector<1x32xf32>
    %58 = tpu.matmul %57, %55, %cst_24 {dimension_numbers = #tpu.dot_dimension_numbers<[1], [1], [0], [0], [0, 0, 1, 0], [], []>} : vector<1x128xbf16>, vector<32x128xbf16>, vector<1x32xf32> -> vector<1x32xf32>
    %59 = vector.broadcast %56 : vector<32x1xf32> to vector<32x32xf32>
    %60 = vector.broadcast %58 : vector<1x32xf32> to vector<32x32xf32>
    %61 = arith.addf %59, %60 : vector<32x32xf32>
    %cst_25 = arith.constant 2.000000e-01 : f32
    %62 = vector.broadcast %cst_25 : f32 to vector<32x32xf32>
    %63 = arith.mulf %62, %61 : vector<32x32xf32>
    %64 = arith.maximumf %61, %63 : vector<32x32xf32>
    %cst_26 = arith.constant 0.000000e+00 : f32
    %65 = vector.broadcast %cst_26 : f32 to vector<32x32xf32>
    %66 = arith.cmpf ogt, %1, %65 : vector<32x32xf32>
    %cst_27 = arith.constant -1.000000e+30 : f32
    %67 = vector.broadcast %cst_27 : f32 to vector<32x32xf32>
    %68 = arith.select %66, %64, %67 : vector<32x32xi1>, vector<32x32xf32>
    %cst_28 = arith.constant dense<0xFF800000> : vector<32xf32>
    %69 = vector.multi_reduction <maximumf>, %68, %cst_28 [1] : vector<32x32xf32> to vector<32xf32>
    %70 = vector.shape_cast %69 : vector<32xf32> to vector<32x1xf32>
    %71 = vector.broadcast %70 : vector<32x1xf32> to vector<32x32xf32>
    %72 = arith.subf %68, %71 : vector<32x32xf32>
    %73 = math.exp %72 : vector<32x32xf32>
    %cst_29 = arith.constant dense<0.000000e+00> : vector<32xf32>
    %74 = vector.multi_reduction <add>, %73, %cst_29 [1] : vector<32x32xf32> to vector<32xf32>
    %75 = vector.shape_cast %74 : vector<32xf32> to vector<32x1xf32>
    %76 = tpu.reciprocal %75 {approx = true} : vector<32x1xf32> -> vector<32x1xf32>
    %77 = vector.broadcast %76 : vector<32x1xf32> to vector<32x32xf32>
    %78 = arith.mulf %73, %77 : vector<32x32xf32>
    %79 = arith.truncf %78 : vector<32x32xf32> to vector<32x32xbf16>
    %cst_30 = arith.constant dense<0.000000e+00> : vector<32x128xf32>
    %80 = tpu.matmul %79, %55, %cst_30 {dimension_numbers = #tpu.dot_dimension_numbers<[1], [0], [0], [1], [0, 0, 1, 1], [], []>} : vector<32x32xbf16>, vector<32x128xbf16>, vector<32x128xf32> -> vector<32x128xf32>
    %81 = vector.broadcast %51 : vector<1x128xf32> to vector<32x128xf32>
    %82 = arith.addf %80, %81 : vector<32x128xf32>
    %cst_31 = arith.constant 0.000000e+00 : f32
    %83 = vector.broadcast %cst_31 : f32 to vector<32x128xf32>
    %84 = arith.subf %83, %82 : vector<32x128xf32>
    %85 = math.exp %84 : vector<32x128xf32>
    %cst_32 = arith.constant 1.000000e+00 : f32
    %86 = vector.broadcast %cst_32 : f32 to vector<32x128xf32>
    %87 = arith.addf %86, %85 : vector<32x128xf32>
    %88 = tpu.reciprocal %87 {approx = true} : vector<32x128xf32> -> vector<32x128xf32>
    %89 = arith.mulf %82, %88 : vector<32x128xf32>
    %c2 = arith.constant 2 : index
    %c0_33 = arith.constant 0 : index
    %c0_34 = arith.constant 0 : index
    %90 = vector.load %arg3[%c2, %c0_33, %c0_34] : memref<3x32x128xbf16, #tpu.memory_space<vmem>>, vector<1x32x128xbf16>
    %91 = vector.shape_cast %90 : vector<1x32x128xbf16> to vector<32x128xbf16>
    %c2_35 = arith.constant 2 : index
    %c0_36 = arith.constant 0 : index
    %c0_37 = arith.constant 0 : index
    %92 = vector.load %arg4[%c2_35, %c0_36, %c0_37] : memref<3x8x128xf32, #tpu.memory_space<vmem>>, vector<1x8x128xf32>
    %93 = vector.shape_cast %92 : vector<1x8x128xf32> to vector<8x128xf32>
    %94 = vector.extract_strided_slice %93 {offsets = [0, 0], sizes = [1, 128], strides = [1, 1]} : vector<8x128xf32> to vector<1x128xf32>
    %95 = vector.extract_strided_slice %93 {offsets = [1, 0], sizes = [1, 128], strides = [1, 1]} : vector<8x128xf32> to vector<1x128xf32>
    %96 = vector.extract_strided_slice %89 {offsets = [0, 0], sizes = [32, 32], strides = [1, 1]} : vector<32x128xf32> to vector<32x32xf32>
    %97 = arith.truncf %96 : vector<32x32xf32> to vector<32x32xbf16>
    %cst_38 = arith.constant dense<0.000000e+00> : vector<32x128xf32>
    %98 = tpu.matmul %97, %91, %cst_38 {dimension_numbers = #tpu.dot_dimension_numbers<[1], [0], [0], [1], [0, 0, 1, 1], [], []>} : vector<32x32xbf16>, vector<32x128xbf16>, vector<32x128xf32> -> vector<32x128xf32>
    %99 = arith.truncf %98 : vector<32x128xf32> to vector<32x128xbf16>
    %100 = vector.extract_strided_slice %98 {offsets = [0, 127], sizes = [32, 1], strides = [1, 1]} : vector<32x128xf32> to vector<32x1xf32>
    %101 = arith.truncf %94 : vector<1x128xf32> to vector<1x128xbf16>
    %cst_39 = arith.constant dense<0.000000e+00> : vector<1x32xf32>
    %102 = tpu.matmul %101, %99, %cst_39 {dimension_numbers = #tpu.dot_dimension_numbers<[1], [1], [0], [0], [0, 0, 1, 0], [], []>} : vector<1x128xbf16>, vector<32x128xbf16>, vector<1x32xf32> -> vector<1x32xf32>
    %103 = vector.broadcast %100 : vector<32x1xf32> to vector<32x32xf32>
    %104 = vector.broadcast %102 : vector<1x32xf32> to vector<32x32xf32>
    %105 = arith.addf %103, %104 : vector<32x32xf32>
    %cst_40 = arith.constant 2.000000e-01 : f32
    %106 = vector.broadcast %cst_40 : f32 to vector<32x32xf32>
    %107 = arith.mulf %106, %105 : vector<32x32xf32>
    %108 = arith.maximumf %105, %107 : vector<32x32xf32>
    %cst_41 = arith.constant 0.000000e+00 : f32
    %109 = vector.broadcast %cst_41 : f32 to vector<32x32xf32>
    %110 = arith.cmpf ogt, %1, %109 : vector<32x32xf32>
    %cst_42 = arith.constant -1.000000e+30 : f32
    %111 = vector.broadcast %cst_42 : f32 to vector<32x32xf32>
    %112 = arith.select %110, %108, %111 : vector<32x32xi1>, vector<32x32xf32>
    %cst_43 = arith.constant dense<0xFF800000> : vector<32xf32>
    %113 = vector.multi_reduction <maximumf>, %112, %cst_43 [1] : vector<32x32xf32> to vector<32xf32>
    %114 = vector.shape_cast %113 : vector<32xf32> to vector<32x1xf32>
    %115 = vector.broadcast %114 : vector<32x1xf32> to vector<32x32xf32>
    %116 = arith.subf %112, %115 : vector<32x32xf32>
    %117 = math.exp %116 : vector<32x32xf32>
    %cst_44 = arith.constant dense<0.000000e+00> : vector<32xf32>
    %118 = vector.multi_reduction <add>, %117, %cst_44 [1] : vector<32x32xf32> to vector<32xf32>
    %119 = vector.shape_cast %118 : vector<32xf32> to vector<32x1xf32>
    %120 = tpu.reciprocal %119 {approx = true} : vector<32x1xf32> -> vector<32x1xf32>
    %121 = vector.broadcast %120 : vector<32x1xf32> to vector<32x32xf32>
    %122 = arith.mulf %117, %121 : vector<32x32xf32>
    %123 = arith.truncf %122 : vector<32x32xf32> to vector<32x32xbf16>
    %cst_45 = arith.constant dense<0.000000e+00> : vector<32x128xf32>
    %124 = tpu.matmul %123, %99, %cst_45 {dimension_numbers = #tpu.dot_dimension_numbers<[1], [0], [0], [1], [0, 0, 1, 1], [], []>} : vector<32x32xbf16>, vector<32x128xbf16>, vector<32x128xf32> -> vector<32x128xf32>
    %125 = vector.broadcast %95 : vector<1x128xf32> to vector<32x128xf32>
    %126 = arith.addf %124, %125 : vector<32x128xf32>
    %127 = tpu.iota {dimensions = array<i32: 1>} : vector<32x128xi32>
    %c8_i32 = arith.constant 8 : i32
    %128 = vector.broadcast %c8_i32 : i32 to vector<32x128xi32>
    %129 = arith.cmpi slt, %127, %128 : vector<32x128xi32>
    %cst_46 = arith.constant -1.000000e+30 : f32
    %130 = vector.broadcast %cst_46 : f32 to vector<32x128xf32>
    %131 = arith.select %129, %126, %130 : vector<32x128xi1>, vector<32x128xf32>
    %cst_47 = arith.constant dense<0xFF800000> : vector<32xf32>
    %132 = vector.multi_reduction <maximumf>, %131, %cst_47 [1] : vector<32x128xf32> to vector<32xf32>
    %133 = vector.shape_cast %132 : vector<32xf32> to vector<32x1xf32>
    %134 = vector.broadcast %133 : vector<32x1xf32> to vector<32x128xf32>
    %135 = arith.subf %126, %134 : vector<32x128xf32>
    %136 = math.exp %135 : vector<32x128xf32>
    %cst_48 = arith.constant 0.000000e+00 : f32
    %137 = vector.broadcast %cst_48 : f32 to vector<32x128xf32>
    %138 = arith.select %129, %136, %137 : vector<32x128xi1>, vector<32x128xf32>
    %cst_49 = arith.constant dense<0.000000e+00> : vector<32xf32>
    %139 = vector.multi_reduction <add>, %138, %cst_49 [1] : vector<32x128xf32> to vector<32xf32>
    %140 = vector.shape_cast %139 : vector<32xf32> to vector<32x1xf32>
    %141 = math.log %140 : vector<32x1xf32>
    %142 = vector.broadcast %141 : vector<32x1xf32> to vector<32x128xf32>
    %143 = arith.subf %135, %142 : vector<32x128xf32>
    %c0_50 = arith.constant 0 : index
    %c0_51 = arith.constant 0 : index
    %144 = vector.load %arg5[%c0_50, %c0_51] : memref<32x128xf32, #tpu.memory_space<vmem>>, vector<32x128xf32>
    tpu.vector_store %arg5[%c0_50, %c0_51], %143 {strides = array<i32>} : memref<32x128xf32, #tpu.memory_space<vmem>>, vector<32x128xf32>,
    return
  }
  func.func @transform_0(%arg0: i32) -> (i32, i32) {
    %c0_i32 = arith.constant 0 : i32
    %c0_i32_0 = arith.constant 0 : i32
    %c0_i32_1 = arith.constant 0 : i32
    return %c0_i32, %c0_i32_0 : i32, i32
  }
  func.func @transform_1(%arg0: i32) -> (i32, i32) {
    %c0_i32 = arith.constant 0 : i32
    %c0_i32_0 = arith.constant 0 : i32
    %c0_i32_1 = arith.constant 0 : i32
    return %c0_i32, %c0_i32_0 : i32, i32
  }
  func.func @transform_2(%arg0: i32) -> (i32, i32, i32) {
    %c0_i32 = arith.constant 0 : i32
    %c0_i32_0 = arith.constant 0 : i32
    %c0_i32_1 = arith.constant 0 : i32
    %c0_i32_2 = arith.constant 0 : i32
    return %c0_i32, %c0_i32_0, %c0_i32_1 : i32, i32, i32
  }
  func.func @transform_3(%arg0: i32) -> (i32, i32, i32) {
    %c0_i32 = arith.constant 0 : i32
    %c0_i32_0 = arith.constant 0 : i32
    %c0_i32_1 = arith.constant 0 : i32
    %c0_i32_2 = arith.constant 0 : i32
    return %c0_i32, %c0_i32_0, %c0_i32_1 : i32, i32, i32
  }
  func.func @transform_4(%arg0: i32) -> (i32, i32) {
    %c0_i32 = arith.constant 0 : i32
    %c0_i32_0 = arith.constant 0 : i32
    %c0_i32_1 = arith.constant 0 : i32
    return %c0_i32, %c0_i32_0 : i32, i32
  }
}

</mosaic_0001>

<bundles_post_ra>
// kernel: tpu_custom_call.1
= control target key start
LH: loop header
LB: loop body
LE: loop exit
PB: predicated region body
PF: predicated region fallthrough
CT: control target
= control target key end

     0   :  { %9 = vsyncpa [#allocation3], 0  ;;  %s1166_s0 = inlined_call_operand.hbm [shape: f32[32,128], index: 0, kind: input, shape index: {}]   ;;  %s1167_s1 = inlined_call_operand.hbm [shape: f32[32,32], index: 1, kind: input, shape index: {}]   ;;  %s1168_s2 = inlined_call_operand.hbm [shape: bf16[3,32,128], index: 2, kind: input, shape index: {}]   ;;  %s1169_s3 = inlined_call_operand.hbm [shape: f32[3,8,128], index: 3, kind: input, shape index: {}]   ;;  %s1170_s4 = inlined_call_operand.hbm [shape: f32[32,128], index: 4, kind: output, shape index: {}]  }
   0x1   :  { %10 = vsyncpa [#allocation6], 0 }
   0x2   :  { %11 = vsyncpa [#allocation9], 0 }
   0x3   :  { %12 = vsyncpa [#allocation4], 0  ;;  %s30_s17 = sshll.u32 %s1167_s1, 4  ;;  %s1009_s18 = smov [#allocation5]   ;;  %s31_s17 = int_to_ptr.hbm [resolvable:$true] %s30_s17 }
   0x4   :  { %s32_s19 = sshll.u32 %s1009_s18, 4  ;;  %s17_s22 = sshll.u32 %s1166_s0, 4  ;;  %s33_s19 = int_to_ptr.vmem [resolvable:$true] %s32_s19  ;;  %s18_s22 = int_to_ptr.hbm [resolvable:$true] %s17_s22 }
   0x5   :  { %s1010_s23 = smov 128   ;;  %s1011_s24 = smov 8  }
   0x6   :  { %38 = dma.hbm_to_vmem [thread:$0]  %s31_s17, 512, %s33_s19, [#allocation6], %s1010_s23, %s1010_s23, %s1011_s24  }
   0x7   :  { %s1012_s25 = smov [#allocation2]   ;;  %s43_s1 = sshll.u32 %s1168_s2, 4  ;;  %s44_s1 = int_to_ptr.hbm [resolvable:$true] %s43_s1 }
   0x8   :  { %s19_s26 = sshll.u32 %s1012_s25, 4  ;;  %s1013_s0 = smov [#allocation7]   ;;  %s20_s26 = int_to_ptr.vmem [resolvable:$true] %s19_s26 }
   0x9   :  { %25 = dma.hbm_to_vmem [thread:$0]  %s18_s22, 512, %s20_s26, [#allocation3], %s1010_s23, %s1010_s23, %s1011_s24  }
   0xa   :  { %s45_s29 = sshll.u32 %s1013_s0, 4  ;;  %s56_s6 = sshll.u32 %s1169_s3, 4  ;;  %s46_s29 = int_to_ptr.vmem [resolvable:$true] %s45_s29  ;;  %s57_s6 = int_to_ptr.hbm [resolvable:$true] %s56_s6 }
   0xb   :  { %s1014_s7 = smov 64   ;;  %s1015_s8 = smov 4  }
   0xc   :  { %51 = dma.hbm_to_vmem [thread:$0]  %s44_s1, 768, %s46_s29, [#allocation6], %s1014_s7, %s1014_s7, %s1015_s8  }
   0xd   :  { %s1016_s9 = smov [#allocation8]  }
   0xe   :  { %s58_s10 = sshll.u32 %s1016_s9, 4  ;;  %s59_s10 = int_to_ptr.vmem [resolvable:$true] %s58_s10 }
   0xf   :  { %64 = dma.hbm_to_vmem [thread:$0]  %s57_s6, 384, %s59_s10, [#allocation9], %s1010_s23, %s1010_s23, %s1011_s24  }
  0x10   :  { %1001 = dma.done.wait [#allocation3], 512  }
  0x11   :  { %1002 = vsyncadd [#allocation3], 4294966784 }
  0x12   :  { %1003 = dma.done.wait [#allocation6], 1280  }
  0x13   :  { %1004 = vsyncadd [#allocation6], 4294966016 }
  0x14   :  { %1005 = dma.done.wait [#allocation9], 384  }
  0x15   :  { %1006 = vsyncadd [#allocation9], 4294966912  ;;  %v1017_v0 = vmov 127   ;;  %v767_v1 = vld [vmem:[#allocation7 + $0x8] sm:$0xff]  ;;  %v766_v2 = vld [vmem:[#allocation7] sm:$0xff]  ;;  %vm109_vm0 = vcmask 261120  }
  0x16   :  { %782 = vset.pattern.permute.xlu0 %v1017_v0  ;;  %783 = vset.pattern.permute.xlu1 %v1017_v0  ;;  %v82_v3 = vld [vmem:[#allocation2] sm:$0xff]  ;;  %v83_v4 = vld [vmem:[#allocation2 + $0x8] sm:$0xff]  ;;  %v84_v6 = vld [vmem:[#allocation2 + $0x10] sm:$0xff]  ;;  %s1018_s2 = smov [#allocation10]   ;;  %s715_s13 = sshll.u32 %s1170_s4, 4  ;;  %s716_s13 = int_to_ptr.hbm [resolvable:$true] %s715_s13 }
  0x17   :  { %784 = vset.pattern.permute.xlu2 %v1017_v0  ;;  %122 = vmatpush.bf16.msra.mxu0 %v767_v1  ;;  %v95_v5 = vpack.c.bf16 %v83_v4, %v82_v3  ;;  %v85_v7 = vld [vmem:[#allocation2 + $0x18] sm:$0xff]  ;;  %v1067_v15 = vld [vmem:[#allocation8] sm:$0xff]  ;;  %v1075_v27 = vld [vmem:[#allocation5] sm:$0xff]  ;;  %s713_s3 = sshll.u32 %s1018_s2, 4  ;;  %s714_s3 = int_to_ptr.vmem [resolvable:$true] %s713_s3 }
  0x18   :  { %v96_v8 = vpack.c.bf16 %v85_v7, %v84_v6  ;;  %v137_v16 = vpack.c.bf16 %v1067_v15, %v1067_v15  ;;  %v1071_v23 = vld [vmem:[#allocation5 + $0x18] sm:$0xff]  ;;  %v1073_v25 = vld [vmem:[#allocation5 + $0x10] sm:$0xff]  ;;  %vm184_vm3 = vcmp.gt.f32.partialorder %v1075_v27, 0.0  ;;  %v1089_v44 = vld [vmem:[#allocation5 + $0x8] sm:$0xff] }
  0x19   :  { %vm187_vm1 = vcmp.gt.f32.partialorder %v1071_v23, 0.0  ;;  %vm186_vm2 = vcmp.gt.f32.partialorder %v1073_v25, 0.0  ;;  %vm185_vm4 = vcmp.gt.f32.partialorder %v1089_v44, 0.0 }
  0x1b   :  { %123 = vmatpush.bf16.msra.mxu0 %v766_v2 }
  0x1e   :  { %738 = vmatmul.msk.bf16.vlgmr.msra.gmra.mxu0 %vm109_vm0, %v95_v5 }
  0x2e   :  { %739 = vmatmul.msk.bf16.gmra.mxu0 %vm109_vm0, %v96_v8 }
  0x9b   :  { %v125_v9 = vpop.f32.mrf.mxu0 }
  0x9c   :  { %153 = vperm.xlu0 %782, %v125_v9  }
  0xa3   :  { %v127_v10 = vpop.f32.mrf.mxu0 }
  0xa4   :  { %158 = vperm.xlu0 %782, %v127_v10   ;;  %v135_v14 = vpack.c.bf16 %v127_v10, %v125_v9 }
  0xab   :  { %v130_v11 = vpop.f32.mrf.mxu0 }
  0xac   :  { %163 = vperm.xlu1 %783, %v130_v11  }
  0xb3   :  { %v132_v12 = vpop.f32.mrf.mxu0 }
  0xb4   :  { %168 = vperm.xlu1 %783, %v132_v12   ;;  %v136_v13 = vpack.c.bf16 %v132_v12, %v130_v11 }
  0xb6   :  { %144 = vmatpush.bf16.xpose.msra.mxu1 %v136_v13  ;;  %251 = vmatpush.bf16.msra.mxu2 %v136_v13 }
  0xba   :  { %252 = vmatpush.bf16.msra.mxu2 %v135_v14 }
  0xbe   :  { %145 = vmatpush.bf16.xpose.msra.mxu1 %v135_v14 }
  0xc5   :  { %146 = vmatmul.bf16.vlgmr.msra.gmra.mxu1 %v137_v16 }
 0x10e   :  { %v154_v18 = vpop.permute.xlu0 %153 }
 0x116   :  { %v159_v22 = vpop.permute.xlu0 %158 }
 0x11e   :  { %v164_v17 = vpop.permute.xlu1 %163 }
 0x126   :  { %v169_v21 = vpop.permute.xlu1 %168 }
 0x142   :  { %v147_v19 = vpop.f32.mrf.mxu1 }
 0x143   :  { %v171_v20 = vperm.slane %v147_v19, 0  ;;  %v769_v19 = vld [vmem:[#allocation7 + $0x18] sm:$0xff] }
 0x144   :  { %321 = vmatpush.bf16.msra.mxu3 %v769_v19 }
 0x145   :  { %v175_v24 = vadd.f32 %v171_v20, %v169_v21  ;;  %v174_v26 = vadd.f32 %v171_v20, %v164_v17  ;;  %v172_v28 = vadd.f32 %v171_v20, %v154_v18  ;;  %v173_v29 = vadd.f32 %v171_v20, %v159_v22  ;;  %v768_v21 = vld [vmem:[#allocation7 + $0x10] sm:$0xff] }
 0x146   :  { %v238_v20 = vperm.slane %v1067_v15, 1 }
 0x147   :  { %v179_v30 = vmul.f32 0.2, %v175_v24  ;;  %v178_v31 = vmul.f32 0.2, %v174_v26  ;;  %v176_v32 = vmul.f32 0.2, %v172_v28 }
 0x148   :  { %v177_v37 = vmul.f32 0.2, %v173_v29  ;;  %322 = vmatpush.bf16.msra.mxu3 %v768_v21 }
 0x149   :  { %v183_v33 = vmax.f32 %v175_v24, %v179_v30  ;;  %v182_v34 = vmax.f32 %v174_v26, %v178_v31  ;;  %v180_v35 = vmax.f32 %v172_v28, %v176_v32 }
 0x14a   :  { %v149_v36 = vpop.f32.mrf.mxu1  ;;  %v181_v45 = vmax.f32 %v173_v29, %v177_v37 }
 0x14b   :  { %v191_v38 = vsel %vm187_vm1, %v183_v33, -1e+30  ;;  %v190_v39 = vsel %vm186_vm2, %v182_v34, -1e+30  ;;  %v188_v40 = vsel %vm184_vm3, %v180_v35, -1e+30 }
 0x14c   :  { %v201_v41 = vsel %vm109_vm0, %v191_v38, -inf  ;;  %v198_v42 = vsel %vm109_vm0, %v190_v39, -inf  ;;  %v192_v43 = vsel %vm109_vm0, %v188_v40, -inf  ;;  %v189_v46 = vsel %vm185_vm4, %v181_v45, -1e+30 }
 0x14d   :  { %202 = vmax.xlane.f32.xlu1 %v201_v41  ;;  %199 = vmax.xlane.f32.xlu0 %v198_v42  ;;  %v195_v47 = vsel %vm109_vm0, %v189_v46, -inf }
 0x14e   :  { %193 = vmax.xlane.f32.xlu2 %v192_v43 }
 0x156   :  { %196 = vmax.xlane.f32.xlu2 %v195_v47 }
 0x1c0   :  { %v200_v52 = vpop.xlane.xlu0 %199  ;;  %v203_v59 = vpop.xlane.xlu1 %202 }
 0x1c1   :  { %v194_v48 = vpop.xlane.xlu2 %193  ;;  %v206_v56 = vsub.f32 %v190_v39, %v200_v52  ;;  %v207_v61 = vsub.f32 %v191_v38, %v203_v59 }
 0x1c2   :  { %v204_v49 = vsub.f32 %v188_v40, %v194_v48 }
 0x1c3   :  { %v212_v58 = vmul.f32 1.442695, %v206_v56  ;;  %v214_v63 = vmul.f32 1.442695, %v207_v61 }
 0x1c4   :  { %v208_v50 = vmul.f32 1.442695, %v204_v49 }
 0x1c6   :  { %785 = vpow2.f32 %v208_v50 }
 0x1c9   :  { %v197_v51 = vpop.xlane.xlu2 %196 }
 0x1ca   :  { %v205_v53 = vsub.f32 %v189_v46, %v197_v51 }
 0x1cc   :  { %v210_v54 = vmul.f32 1.442695, %v205_v53  ;;  %v786_v55 = vpop.eup %785 }
 0x1cd   :  { %v216_v57 = vsel %vm109_vm0, %v786_v55, 0.0 }
 0x1ce   :  { %787 = vpow2.f32 %v210_v54  ;;  %217 = vadd.xlane.f32.xlu2 %v216_v57 }
 0x1cf   :  { %789 = vpow2.f32 %v212_v58 }
 0x1d0   :  { %791 = vpow2.f32 %v214_v63 }
 0x1d4   :  { %v788_v60 = vpop.eup %787 }
 0x1d5   :  { %v219_v62 = vsel %vm109_vm0, %v788_v60, 0.0  ;;  %v790_v0 = vpop.eup %789 }
 0x1d6   :  { %220 = vadd.xlane.f32.xlu2 %v219_v62  ;;  %v222_v1 = vsel %vm109_vm0, %v790_v0, 0.0  ;;  %v792_v2 = vpop.eup %791 }
 0x1d7   :  { %v225_v3 = vsel %vm109_vm0, %v792_v2, 0.0 }
 0x1de   :  { %223 = vadd.xlane.f32.xlu2 %v222_v1  ;;  %v1104_v1 = vld [vmem:[#allocation8 + $0x8] sm:$0xff] }
 0x1e6   :  { %226 = vadd.xlane.f32.xlu2 %v225_v3 }
 0x241   :  { %v218_v4 = vpop.xlane.xlu2 %217 }
 0x242   :  { %793 = vrcp.f32 %v218_v4 }
 0x248   :  { %v794_v6 = vpop.eup %793 }
 0x249   :  { %v221_v5 = vpop.xlane.xlu2 %220  ;;  %v232_v9 = vmul.f32 %v794_v6, %v786_v55 }
 0x24a   :  { %795 = vrcp.f32 %v221_v5 }
 0x250   :  { %v796_v7 = vpop.eup %795 }
 0x251   :  { %v224_v8 = vpop.xlane.xlu2 %223  ;;  %v233_v10 = vmul.f32 %v796_v7, %v788_v60 }
 0x252   :  { %797 = vrcp.f32 %v224_v8 }
 0x253   :  { %v236_v11 = vpack.c.bf16 %v233_v10, %v232_v9 }
 0x255   :  { %740 = vmatmul.msk.bf16.vlgmr.msra.gmra.mxu2 %vm109_vm0, %v236_v11 }
 0x258   :  { %v798_v13 = vpop.eup %797 }
 0x259   :  { %v227_v12 = vpop.xlane.xlu2 %226  ;;  %v234_v16 = vmul.f32 %v798_v13, %v790_v0 }
 0x25a   :  { %799 = vrcp.f32 %v227_v12 }
 0x260   :  { %v800_v14 = vpop.eup %799 }
 0x261   :  { %v235_v17 = vmul.f32 %v800_v14, %v792_v2  ;;  %v336_v2 = vpack.c.bf16 %v1104_v1, %v1104_v1 }
 0x263   :  { %v237_v18 = vpack.c.bf16 %v235_v17, %v234_v16 }
 0x265   :  { %741 = vmatmul.msk.bf16.gmra.mxu2 %vm109_vm0, %v237_v18 }
 0x2d8   :  { %v254_v22 = vpop.f32.mrf.mxu2 }
 0x2d9   :  { %v255_v24 = vadd.f32 %v254_v22, %v238_v20 }
 0x2db   :  { %v264_v26 = vsub.f32 0.0, %v255_v24 }
 0x2dd   :  { %v268_v28 = vmul.f32 1.442695, %v264_v26 }
 0x2df   :  { %801 = vpow2.f32 %v268_v28 }
 0x2e0   :  { %v256_v29 = vpop.f32.mrf.mxu2 }
 0x2e1   :  { %v257_v30 = vadd.f32 %v256_v29, %v238_v20 }
 0x2e3   :  { %v265_v31 = vsub.f32 0.0, %v257_v30 }
 0x2e5   :  { %v270_v32 = vmul.f32 1.442695, %v265_v31  ;;  %v802_v33 = vpop.eup %801 }
 0x2e6   :  { %v276_v36 = vadd.f32 1.0, %v802_v33 }
 0x2e7   :  { %803 = vpow2.f32 %v270_v32 }
 0x2e8   :  { %v259_v34 = vpop.f32.mrf.mxu2  ;;  %805 = vrcp.f32 %v276_v36 }
 0x2e9   :  { %v260_v35 = vadd.f32 %v259_v34, %v238_v20 }
 0x2eb   :  { %v266_v37 = vsub.f32 0.0, %v260_v35 }
 0x2ed   :  { %v804_v38 = vpop.eup %803  ;;  %v272_v39 = vmul.f32 1.442695, %v266_v37 }
 0x2ee   :  { %v277_v15 = vadd.f32 1.0, %v804_v38  ;;  %v806_v43 = vpop.eup %805 }
 0x2ef   :  { %v284_v48 = vmul.f32 %v806_v43, %v255_v24 }
 0x2f0   :  { %807 = vrcp.f32 %v277_v15  ;;  %v261_v40 = vpop.f32.mrf.mxu2 }
 0x2f1   :  { %809 = vpow2.f32 %v272_v39  ;;  %v262_v41 = vadd.f32 %v261_v40, %v238_v20 }
 0x2f3   :  { %v267_v42 = vsub.f32 0.0, %v262_v41 }
 0x2f5   :  { %v274_v45 = vmul.f32 1.442695, %v267_v42 }
 0x2f6   :  { %v808_v46 = vpop.eup %807 }
 0x2f7   :  { %v810_v47 = vpop.eup %809  ;;  %v285_v49 = vmul.f32 %v808_v46, %v257_v30  ;;  %811 = vpow2.f32 %v274_v45 }
 0x2f8   :  { %v278_v51 = vadd.f32 1.0, %v810_v47 }
 0x2f9   :  { %v295_v50 = vpack.c.bf16 %v285_v49, %v284_v48 }
 0x2fa   :  { %813 = vrcp.f32 %v278_v51 }
 0x2fb   :  { %750 = vmatmul.msk.bf16.vlgmr.msra.gmra.mxu3 %vm109_vm0, %v295_v50 }
 0x2fd   :  { %v812_v52 = vpop.eup %811 }
 0x2fe   :  { %v279_v53 = vadd.f32 1.0, %v812_v52 }
 0x300   :  { %815 = vrcp.f32 %v279_v53  ;;  %v814_v54 = vpop.eup %813 }
 0x301   :  { %v286_v56 = vmul.f32 %v814_v54, %v260_v35 }
 0x306   :  { %v816_v55 = vpop.eup %815 }
 0x307   :  { %v287_v57 = vmul.f32 %v816_v55, %v262_v41 }
 0x309   :  { %v296_v58 = vpack.c.bf16 %v287_v57, %v286_v56 }
 0x30b   :  { %751 = vmatmul.msk.bf16.gmra.mxu3 %vm109_vm0, %v296_v58 }
 0x37e   :  { %v324_v59 = vpop.f32.mrf.mxu3 }
 0x37f   :  { %352 = vperm.xlu2 %784, %v324_v59  }
 0x386   :  { %v326_v60 = vpop.f32.mrf.mxu3 }
 0x387   :  { %357 = vperm.xlu0 %782, %v326_v60   ;;  %v334_v0 = vpack.c.bf16 %v326_v60, %v324_v59 }
 0x38e   :  { %v329_v61 = vpop.f32.mrf.mxu3 }
 0x38f   :  { %362 = vperm.xlu1 %783, %v329_v61  }
 0x396   :  { %v331_v62 = vpop.f32.mrf.mxu3 }
 0x397   :  { %367 = vperm.xlu2 %784, %v331_v62   ;;  %v335_v63 = vpack.c.bf16 %v331_v62, %v329_v61 }
 0x399   :  { %343 = vmatpush.bf16.xpose.msrb.mxu3 %v335_v63  ;;  %446 = vmatpush.bf16.msrb.mxu0 %v335_v63 }
 0x39d   :  { %447 = vmatpush.bf16.msrb.mxu0 %v334_v0 }
 0x3a1   :  { %344 = vmatpush.bf16.xpose.msrb.mxu3 %v334_v0 }
 0x3a8   :  { %345 = vmatmul.bf16.vlgmr.msrb.gmra.mxu3 %v336_v2 }
 0x3d9   :  { %v353_v3 = vpop.permute.xlu2 %352 }
 0x3f1   :  { %v368_v8 = vpop.permute.xlu2 %367 }
 0x3f9   :  { %v358_v6 = vpop.permute.xlu0 %357 }
 0x401   :  { %v363_v7 = vpop.permute.xlu1 %362 }
 0x42b   :  { %v346_v4 = vpop.f32.mrf.mxu3 }
 0x42c   :  { %v370_v5 = vperm.slane %v346_v4, 0 }
 0x42e   :  { %v373_v9 = vadd.f32 %v370_v5, %v363_v7  ;;  %v372_v10 = vadd.f32 %v370_v5, %v358_v6  ;;  %v371_v11 = vadd.f32 %v370_v5, %v353_v3  ;;  %v374_v12 = vadd.f32 %v370_v5, %v368_v8  ;;  %v771_v5 = vld [vmem:[#allocation7 + $0x28] sm:$0xff]  ;;  %v770_v7 = vld [vmem:[#allocation7 + $0x20] sm:$0xff] }
 0x42f   :  { %516 = vmatpush.bf16.msrb.mxu2 %v771_v5  ;;  %v433_v6 = vperm.slane %v1104_v1, 1 }
 0x430   :  { %v377_v13 = vmul.f32 0.2, %v373_v9  ;;  %v376_v14 = vmul.f32 0.2, %v372_v10  ;;  %v375_v16 = vmul.f32 0.2, %v371_v11 }
 0x431   :  { %v378_v21 = vmul.f32 0.2, %v374_v12 }
 0x432   :  { %v381_v17 = vmax.f32 %v373_v9, %v377_v13  ;;  %v380_v18 = vmax.f32 %v372_v10, %v376_v14  ;;  %v379_v19 = vmax.f32 %v371_v11, %v375_v16 }
 0x433   :  { %v348_v20 = vpop.f32.mrf.mxu3  ;;  %v382_v31 = vmax.f32 %v374_v12, %v378_v21  ;;  %517 = vmatpush.bf16.msrb.mxu2 %v770_v7 }
 0x434   :  { %v385_v22 = vsel %vm186_vm2, %v381_v17, -1e+30  ;;  %v384_v24 = vsel %vm185_vm4, %v380_v18, -1e+30  ;;  %v383_v26 = vsel %vm184_vm3, %v379_v19, -1e+30 }
 0x435   :  { %v393_v28 = vsel %vm109_vm0, %v385_v22, -inf  ;;  %v390_v29 = vsel %vm109_vm0, %v384_v24, -inf  ;;  %v387_v30 = vsel %vm109_vm0, %v383_v26, -inf  ;;  %v386_v32 = vsel %vm187_vm1, %v382_v31, -1e+30 }
 0x436   :  { %394 = vmax.xlane.f32.xlu1 %v393_v28  ;;  %391 = vmax.xlane.f32.xlu2 %v390_v29  ;;  %v396_v33 = vsel %vm109_vm0, %v386_v32, -inf }
 0x437   :  { %388 = vmax.xlane.f32.xlu0 %v387_v30 }
 0x43f   :  { %397 = vmax.xlane.f32.xlu0 %v396_v33 }
 0x4a9   :  { %v395_v34 = vpop.xlane.xlu1 %394  ;;  %v392_v35 = vpop.xlane.xlu2 %391 }
 0x4aa   :  { %v401_v36 = vsub.f32 %v385_v22, %v395_v34  ;;  %v389_v37 = vpop.xlane.xlu0 %388  ;;  %v400_v38 = vsub.f32 %v384_v24, %v392_v35 }
 0x4ab   :  { %v399_v39 = vsub.f32 %v383_v26, %v389_v37 }
 0x4ac   :  { %v407_v15 = vmul.f32 1.442695, %v401_v36  ;;  %v405_v40 = vmul.f32 1.442695, %v400_v38 }
 0x4ad   :  { %v403_v41 = vmul.f32 1.442695, %v399_v39 }
 0x4ae   :  { %817 = vpow2.f32 %v407_v15 }
 0x4af   :  { %819 = vpow2.f32 %v403_v41 }
 0x4b0   :  { %821 = vpow2.f32 %v405_v40 }
 0x4b2   :  { %v398_v42 = vpop.xlane.xlu0 %397 }
 0x4b3   :  { %v402_v43 = vsub.f32 %v386_v32, %v398_v42 }
 0x4b4   :  { %v818_v45 = vpop.eup %817 }
 0x4b5   :  { %v820_v46 = vpop.eup %819  ;;  %v409_v47 = vmul.f32 1.442695, %v402_v43  ;;  %v417_v48 = vsel %vm109_vm0, %v818_v45, 0.0 }
 0x4b6   :  { %v822_v49 = vpop.eup %821  ;;  %v411_v50 = vsel %vm109_vm0, %v820_v46, 0.0  ;;  %418 = vadd.xlane.f32.xlu0 %v417_v48 }
 0x4b7   :  { %823 = vpow2.f32 %v409_v47  ;;  %412 = vadd.xlane.f32.xlu2 %v411_v50  ;;  %v414_v51 = vsel %vm109_vm0, %v822_v49, 0.0 }
 0x4b8   :  { %415 = vadd.xlane.f32.xlu1 %v414_v51  ;;  %v1129_v51 = vld [vmem:[#allocation8 + $0x10] sm:$0xff] }
 0x4bd   :  { %v824_v52 = vpop.eup %823 }
 0x4be   :  { %v420_v53 = vsel %vm109_vm0, %v824_v52, 0.0 }
 0x4bf   :  { %421 = vadd.xlane.f32.xlu2 %v420_v53 }
 0x529   :  { %v419_v62 = vpop.xlane.xlu0 %418 }
 0x52a   :  { %v413_v54 = vpop.xlane.xlu2 %412 }
 0x52b   :  { %v416_v55 = vpop.xlane.xlu1 %415  ;;  %825 = vrcp.f32 %v413_v54 }
 0x52c   :  { %827 = vrcp.f32 %v416_v55 }
 0x531   :  { %v826_v56 = vpop.eup %825 }
 0x532   :  { %v828_v57 = vpop.eup %827  ;;  %v427_v58 = vmul.f32 %v826_v56, %v820_v46  ;;  %v422_v60 = vpop.xlane.xlu2 %421 }
 0x533   :  { %v428_v59 = vmul.f32 %v828_v57, %v822_v49  ;;  %829 = vrcp.f32 %v422_v60 }
 0x534   :  { %831 = vrcp.f32 %v419_v62 }
 0x535   :  { %v431_v61 = vpack.c.bf16 %v428_v59, %v427_v58 }
 0x537   :  { %752 = vmatmul.msk.bf16.vlgmr.msrb.gmra.mxu0 %vm109_vm0, %v431_v61 }
 0x539   :  { %v830_v63 = vpop.eup %829 }
 0x53a   :  { %v832_v0 = vpop.eup %831  ;;  %v430_v2 = vmul.f32 %v830_v63, %v824_v52  ;;  %v531_v52 = vpack.c.bf16 %v1129_v51, %v1129_v51 }
 0x53b   :  { %v429_v3 = vmul.f32 %v832_v0, %v818_v45 }
 0x53d   :  { %v432_v4 = vpack.c.bf16 %v430_v2, %v429_v3 }
 0x547   :  { %753 = vmatmul.msk.bf16.gmra.mxu0 %vm109_vm0, %v432_v4 }
 0x5b4   :  { %v449_v8 = vpop.f32.mrf.mxu0 }
 0x5b5   :  { %v450_v9 = vadd.f32 %v449_v8, %v433_v6 }
 0x5b7   :  { %v459_v10 = vsub.f32 0.0, %v450_v9 }
 0x5b9   :  { %v463_v11 = vmul.f32 1.442695, %v459_v10 }
 0x5bb   :  { %833 = vpow2.f32 %v463_v11 }
 0x5bc   :  { %v451_v12 = vpop.f32.mrf.mxu0 }
 0x5bd   :  { %v452_v13 = vadd.f32 %v451_v12, %v433_v6 }
 0x5bf   :  { %v460_v14 = vsub.f32 0.0, %v452_v13 }
 0x5c1   :  { %v465_v16 = vmul.f32 1.442695, %v460_v14  ;;  %v834_v17 = vpop.eup %833 }
 0x5c2   :  { %v471_v20 = vadd.f32 1.0, %v834_v17 }
 0x5c3   :  { %835 = vpow2.f32 %v465_v16 }
 0x5c4   :  { %v454_v18 = vpop.f32.mrf.mxu0  ;;  %837 = vrcp.f32 %v471_v20 }
 0x5c5   :  { %v455_v19 = vadd.f32 %v454_v18, %v433_v6 }
 0x5c7   :  { %v461_v21 = vsub.f32 0.0, %v455_v19 }
 0x5c9   :  { %v836_v22 = vpop.eup %835  ;;  %v467_v24 = vmul.f32 1.442695, %v461_v21 }
 0x5ca   :  { %v472_v1 = vadd.f32 1.0, %v836_v22  ;;  %v838_v30 = vpop.eup %837 }
 0x5cb   :  { %v479_v34 = vmul.f32 %v838_v30, %v450_v9 }
 0x5cc   :  { %839 = vrcp.f32 %v472_v1  ;;  %v456_v26 = vpop.f32.mrf.mxu0 }
 0x5cd   :  { %841 = vpow2.f32 %v467_v24  ;;  %v457_v28 = vadd.f32 %v456_v26, %v433_v6 }
 0x5cf   :  { %v462_v29 = vsub.f32 0.0, %v457_v28 }
 0x5d1   :  { %v469_v31 = vmul.f32 1.442695, %v462_v29 }
 0x5d2   :  { %v840_v32 = vpop.eup %839 }
 0x5d3   :  { %v842_v33 = vpop.eup %841  ;;  %v480_v35 = vmul.f32 %v840_v32, %v452_v13  ;;  %843 = vpow2.f32 %v469_v31 }
 0x5d4   :  { %v473_v37 = vadd.f32 1.0, %v842_v33 }
 0x5d5   :  { %v490_v36 = vpack.c.bf16 %v480_v35, %v479_v34 }
 0x5d6   :  { %845 = vrcp.f32 %v473_v37 }
 0x5d7   :  { %762 = vmatmul.msk.bf16.vlgmr.msrb.gmra.mxu2 %vm109_vm0, %v490_v36 }
 0x5d9   :  { %v844_v38 = vpop.eup %843 }
 0x5da   :  { %v474_v39 = vadd.f32 1.0, %v844_v38 }
 0x5dc   :  { %847 = vrcp.f32 %v474_v39  ;;  %v846_v15 = vpop.eup %845 }
 0x5dd   :  { %v481_v41 = vmul.f32 %v846_v15, %v455_v19 }
 0x5e2   :  { %v848_v40 = vpop.eup %847 }
 0x5e3   :  { %v482_v42 = vmul.f32 %v848_v40, %v457_v28 }
 0x5e5   :  { %v491_v43 = vpack.c.bf16 %v482_v42, %v481_v41 }
 0x5e7   :  { %763 = vmatmul.msk.bf16.gmra.mxu2 %vm109_vm0, %v491_v43 }
 0x65a   :  { %v519_v45 = vpop.f32.mrf.mxu2 }
 0x65b   :  { %547 = vperm.xlu1 %783, %v519_v45  }
 0x662   :  { %v521_v46 = vpop.f32.mrf.mxu2 }
 0x663   :  { %552 = vperm.xlu0 %782, %v521_v46   ;;  %v529_v50 = vpack.c.bf16 %v521_v46, %v519_v45 }
 0x66a   :  { %v524_v47 = vpop.f32.mrf.mxu2 }
 0x66b   :  { %557 = vperm.xlu2 %784, %v524_v47  }
 0x672   :  { %v526_v48 = vpop.f32.mrf.mxu2 }
 0x673   :  { %v530_v49 = vpack.c.bf16 %v526_v48, %v524_v47  ;;  %562 = vperm.xlu0 %782, %v526_v48  }
 0x675   :  { %538 = vmatpush.bf16.xpose.msra.mxu3 %v530_v49  ;;  %641 = vmatpush.bf16.msrb.mxu1 %v530_v49 }
 0x679   :  { %642 = vmatpush.bf16.msrb.mxu1 %v529_v50 }
 0x67d   :  { %539 = vmatpush.bf16.xpose.msra.mxu3 %v529_v50  ;;  %v654_v50 = vlaneseq }
 0x684   :  { %540 = vmatmul.bf16.vlgmr.msra.gmra.mxu3 %v531_v52  ;;  %v655_v52 = vand.u32 127, %v654_v50 }
 0x686   :  { %vm656_vm5 = vcmp.lt.s32.totalorder %v655_v52, 8 }
 0x6c5   :  { %v558_v56 = vpop.permute.xlu2 %557 }
 0x6cd   :  { %v548_v57 = vpop.permute.xlu1 %547 }
 0x6d5   :  { %v553_v53 = vpop.permute.xlu0 %552 }
 0x6e5   :  { %v563_v58 = vpop.permute.xlu0 %562 }
 0x707   :  { %v541_v54 = vpop.f32.mrf.mxu3 }
 0x708   :  { %v565_v55 = vperm.slane %v541_v54, 0 }
 0x70a   :  { %v568_v59 = vadd.f32 %v565_v55, %v558_v56  ;;  %v567_v60 = vadd.f32 %v565_v55, %v553_v53  ;;  %v566_v61 = vadd.f32 %v565_v55, %v548_v57  ;;  %v569_v62 = vadd.f32 %v565_v55, %v563_v58 }
 0x70b   :  { %v628_v53 = vperm.slane %v1129_v51, 1 }
 0x70c   :  { %v572_v63 = vmul.f32 0.2, %v568_v59  ;;  %v571_v0 = vmul.f32 0.2, %v567_v60  ;;  %v570_v2 = vmul.f32 0.2, %v566_v61 }
 0x70d   :  { %v573_v7 = vmul.f32 0.2, %v569_v62 }
 0x70e   :  { %v576_v3 = vmax.f32 %v568_v59, %v572_v63  ;;  %v575_v4 = vmax.f32 %v567_v60, %v571_v0  ;;  %v574_v5 = vmax.f32 %v566_v61, %v570_v2 }
 0x70f   :  { %v543_v6 = vpop.f32.mrf.mxu3  ;;  %v577_v14 = vmax.f32 %v569_v62, %v573_v7 }
 0x710   :  { %v580_v8 = vsel %vm186_vm2, %v576_v3, -1e+30  ;;  %v579_v9 = vsel %vm185_vm4, %v575_v4, -1e+30  ;;  %v578_v10 = vsel %vm184_vm3, %v574_v5, -1e+30 }
 0x711   :  { %v588_v11 = vsel %vm109_vm0, %v580_v8, -inf  ;;  %v585_v12 = vsel %vm109_vm0, %v579_v9, -inf  ;;  %v582_v13 = vsel %vm109_vm0, %v578_v10, -inf  ;;  %v581_v25 = vsel %vm187_vm1, %v577_v14, -1e+30 }
 0x712   :  { %589 = vmax.xlane.f32.xlu0 %v588_v11  ;;  %586 = vmax.xlane.f32.xlu2 %v585_v12  ;;  %v591_v16 = vsel %vm109_vm0, %v581_v25, -inf }
 0x713   :  { %583 = vmax.xlane.f32.xlu1 %v582_v13 }
 0x71b   :  { %592 = vmax.xlane.f32.xlu1 %v591_v16 }
 0x785   :  { %v590_v44 = vpop.xlane.xlu0 %589  ;;  %v587_v17 = vpop.xlane.xlu2 %586 }
 0x786   :  { %v596_v27 = vsub.f32 %v580_v8, %v590_v44  ;;  %v595_v18 = vsub.f32 %v579_v9, %v587_v17  ;;  %v584_v19 = vpop.xlane.xlu1 %583 }
 0x787   :  { %v594_v20 = vsub.f32 %v578_v10, %v584_v19 }
 0x788   :  { %v602_v21 = vmul.f32 1.442695, %v596_v27  ;;  %v600_v22 = vmul.f32 1.442695, %v595_v18 }
 0x789   :  { %v598_v24 = vmul.f32 1.442695, %v594_v20 }
 0x78a   :  { %849 = vpow2.f32 %v602_v21 }
 0x78b   :  { %851 = vpow2.f32 %v600_v22 }
 0x78c   :  { %853 = vpow2.f32 %v598_v24 }
 0x78e   :  { %v593_v1 = vpop.xlane.xlu1 %592 }
 0x78f   :  { %v597_v26 = vsub.f32 %v581_v25, %v593_v1 }
 0x790   :  { %v850_v28 = vpop.eup %849 }
 0x791   :  { %v852_v23 = vpop.eup %851  ;;  %v604_v29 = vmul.f32 1.442695, %v597_v26  ;;  %v612_v30 = vsel %vm109_vm0, %v850_v28, 0.0 }
 0x792   :  { %v854_v31 = vpop.eup %853  ;;  %v609_v32 = vsel %vm109_vm0, %v852_v23, 0.0  ;;  %613 = vadd.xlane.f32.xlu1 %v612_v30 }
 0x793   :  { %855 = vpow2.f32 %v604_v29  ;;  %610 = vadd.xlane.f32.xlu0 %v609_v32  ;;  %v606_v33 = vsel %vm109_vm0, %v854_v31, 0.0 }
 0x794   :  { %607 = vadd.xlane.f32.xlu2 %v606_v33 }
 0x799   :  { %v856_v34 = vpop.eup %855 }
 0x79a   :  { %v615_v35 = vsel %vm109_vm0, %v856_v34, 0.0 }
 0x79c   :  { %616 = vadd.xlane.f32.xlu2 %v615_v35 }
 0x805   :  { %v614_v43 = vpop.xlane.xlu1 %613 }
 0x806   :  { %v611_v36 = vpop.xlane.xlu0 %610 }
 0x807   :  { %857 = vrcp.f32 %v611_v36  ;;  %v608_v37 = vpop.xlane.xlu2 %607 }
 0x808   :  { %859 = vrcp.f32 %v608_v37 }
 0x80d   :  { %v858_v38 = vpop.eup %857 }
 0x80e   :  { %v860_v39 = vpop.eup %859  ;;  %v623_v15 = vmul.f32 %v858_v38, %v852_v23 }
 0x80f   :  { %v622_v40 = vmul.f32 %v860_v39, %v854_v31  ;;  %v617_v41 = vpop.xlane.xlu2 %616 }
 0x810   :  { %861 = vrcp.f32 %v617_v41 }
 0x811   :  { %v626_v42 = vpack.c.bf16 %v623_v15, %v622_v40  ;;  %863 = vrcp.f32 %v614_v43 }
 0x813   :  { %764 = vmatmul.msk.bf16.vlgmr.msrb.gmra.mxu1 %vm109_vm0, %v626_v42 }
 0x816   :  { %v862_v45 = vpop.eup %861 }
 0x817   :  { %v864_v46 = vpop.eup %863  ;;  %v625_v47 = vmul.f32 %v862_v45, %v856_v34 }
 0x818   :  { %v624_v48 = vmul.f32 %v864_v46, %v850_v28 }
 0x81a   :  { %v627_v49 = vpack.c.bf16 %v625_v47, %v624_v48 }
 0x823   :  { %765 = vmatmul.msk.bf16.gmra.mxu1 %vm109_vm0, %v627_v49 }
 0x890   :  { %v644_v54 = vpop.f32.mrf.mxu1 }
 0x891   :  { %v645_v55 = vadd.f32 %v644_v54, %v628_v53 }
 0x893   :  { %v657_v56 = vsel %vm656_vm5, %v645_v55, -1e+30 }
 0x894   :  { %661 = vmax.xlane.f32.xlu0 %v657_v56 }
 0x898   :  { %v646_v57 = vpop.f32.mrf.mxu1 }
 0x899   :  { %v647_v58 = vadd.f32 %v646_v57, %v628_v53 }
 0x89b   :  { %v658_v59 = vsel %vm656_vm5, %v647_v58, -1e+30 }
 0x89c   :  { %663 = vmax.xlane.f32.xlu1 %v658_v59 }
 0x8a0   :  { %v649_v60 = vpop.f32.mrf.mxu1 }
 0x8a1   :  { %v650_v61 = vadd.f32 %v649_v60, %v628_v53 }
 0x8a3   :  { %v659_v62 = vsel %vm656_vm5, %v650_v61, -1e+30 }
 0x8a4   :  { %665 = vmax.xlane.f32.xlu2 %v659_v62 }
 0x8a8   :  { %v651_v63 = vpop.f32.mrf.mxu1 }
 0x8a9   :  { %v652_v0 = vadd.f32 %v651_v63, %v628_v53 }
 0x8ab   :  { %v660_v51 = vsel %vm656_vm5, %v652_v0, -1e+30 }
 0x8ac   :  { %667 = vmax.xlane.f32.xlu0 %v660_v51 }
 0x907   :  { %v662_v2 = vpop.xlane.xlu0 %661 }
 0x908   :  { %v669_v3 = vsub.f32 %v645_v55, %v662_v2 }
 0x90a   :  { %v673_v4 = vmul.f32 1.442695, %v669_v3 }
 0x90c   :  { %865 = vpow2.f32 %v673_v4 }
 0x90f   :  { %v664_v5 = vpop.xlane.xlu1 %663 }
 0x910   :  { %v670_v6 = vsub.f32 %v647_v58, %v664_v5 }
 0x912   :  { %v866_v7 = vpop.eup %865  ;;  %v675_v8 = vmul.f32 1.442695, %v670_v6 }
 0x913   :  { %v681_v9 = vsel %vm656_vm5, %v866_v7, 0.0 }
 0x914   :  { %867 = vpow2.f32 %v675_v8  ;;  %685 = vadd.xlane.f32.xlu1 %v681_v9 }
 0x917   :  { %v666_v10 = vpop.xlane.xlu2 %665 }
 0x918   :  { %v671_v11 = vsub.f32 %v650_v61, %v666_v10 }
 0x91a   :  { %v868_v12 = vpop.eup %867  ;;  %v677_v13 = vmul.f32 1.442695, %v671_v11 }
 0x91b   :  { %v682_v14 = vsel %vm656_vm5, %v868_v12, 0.0 }
 0x91c   :  { %869 = vpow2.f32 %v677_v13  ;;  %687 = vadd.xlane.f32.xlu2 %v682_v14 }
 0x91f   :  { %v668_v25 = vpop.xlane.xlu0 %667 }
 0x920   :  { %v672_v16 = vsub.f32 %v652_v0, %v668_v25 }
 0x922   :  { %v870_v44 = vpop.eup %869  ;;  %v679_v17 = vmul.f32 1.442695, %v672_v16 }
 0x923   :  { %v683_v27 = vsel %vm656_vm5, %v870_v44, 0.0 }
 0x924   :  { %871 = vpow2.f32 %v679_v17  ;;  %689 = vadd.xlane.f32.xlu0 %v683_v27 }
 0x92a   :  { %v872_v18 = vpop.eup %871 }
 0x92b   :  { %v684_v19 = vsel %vm656_vm5, %v872_v18, 0.0 }
 0x92c   :  { %691 = vadd.xlane.f32.xlu1 %v684_v19 }
 0x987   :  { %v686_v20 = vpop.xlane.xlu1 %685 }
 0x988   :  { %873 = vlog2.f32 %v686_v20 }
 0x98e   :  { %v874_v21 = vpop.eup %873 }
 0x98f   :  { %v694_v22 = vmul.f32 0.6931472, %v874_v21  ;;  %v688_v24 = vpop.xlane.xlu2 %687 }
 0x990   :  { %875 = vlog2.f32 %v688_v24 }
 0x991   :  { %v701_v1 = vsub.f32 %v669_v3, %v694_v22 }
 0x993   :  { %705 = vst [vmem:[#allocation10] sm:$0xff] %v701_v1 }
 0x996   :  { %v876_v26 = vpop.eup %875 }
 0x997   :  { %v696_v28 = vmul.f32 0.6931472, %v876_v26  ;;  %v690_v23 = vpop.xlane.xlu0 %689 }
 0x998   :  { %877 = vlog2.f32 %v690_v23 }
 0x999   :  { %v702_v29 = vsub.f32 %v670_v6, %v696_v28 }
 0x99b   :  { %706 = vst [vmem:[#allocation10 + $0x8] sm:$0xff] %v702_v29 }
 0x99e   :  { %v878_v30 = vpop.eup %877 }
 0x99f   :  { %v698_v31 = vmul.f32 0.6931472, %v878_v30  ;;  %v692_v32 = vpop.xlane.xlu1 %691 }
 0x9a0   :  { %879 = vlog2.f32 %v692_v32 }
 0x9a1   :  { %v703_v33 = vsub.f32 %v671_v11, %v698_v31 }
 0x9a3   :  { %707 = vst [vmem:[#allocation10 + $0x10] sm:$0xff] %v703_v33 }
 0x9a6   :  { %v880_v34 = vpop.eup %879 }
 0x9a7   :  { %v700_v35 = vmul.f32 0.6931472, %v880_v34 }
 0x9a9   :  { %v704_v36 = vsub.f32 %v672_v16, %v700_v35 }
 0x9ab   :  { %708 = vst [vmem:[#allocation10 + $0x18] sm:$0xff] %v704_v36 }
 0x9ac   :  { %721 = dma.vmem_to_hbm [thread:$0]  %s714_s3, 512, %s716_s13, [#allocation4], %s1010_s23, %s1010_s23, %s1011_s24  }
 0x9ad   :  { %1007 = dma.done.wait [#allocation4], 512  }
 0x9ae   :  { %1008 = vsyncadd [#allocation4], 4294966784 }
 0x9af   :  { %726 = vsyncpa [#allocation3], 1 }
 0x9b0   :  { %727 = vsyncpa [#allocation6], 1 }
 0x9b1   :  { %728 = vsyncpa [#allocation9], 1 }
 0x9b2   :  { %729 = vsyncpa [#allocation4], 1 }

</bundles_post_ra>
